<compile_context>
chip_gen: v5e
topology: v5e:2x2
jax: 0.10.0
libtpu: 0.0.40
codegen_flags: <defaults>
</compile_context>

<pallas_src>
import functools
import math

import jax
import jax.numpy as jnp
from jax.experimental import pallas as pl
from jax.experimental.pallas import tpu as pltpu

ALPHA = 1.0
GAMMA = 2.0
SMOOTH = 1e-6  # unused in forward (parity with the PyTorch module)

LANES = 128


def _round_up(x, m):
    return ((x + m - 1) // m) * m


def _focal_elems(x, y, alpha, gamma):
    """Per-element focal loss (pure jnp) for the <=127-element lane tail."""
    x = x.astype(jnp.float32)
    y = y.astype(jnp.float32)
    e = jnp.exp(-jnp.abs(x))
    inv = 1.0 / (1.0 + e)
    p = jnp.where(x >= 0, inv, e * inv)                  # sigmoid(x)
    bce = jnp.maximum(x, 0.0) - x * y + jnp.log1p(e)     # stable BCE w/ logits
    pt = p * y + (1.0 - p) * (1.0 - y)
    omp = 1.0 - pt
    w = omp * omp if gamma == 2.0 else (omp if gamma == 1.0 else omp ** gamma)
    return (w if alpha == 1.0 else alpha * w) * bce


def _focal_partial_kernel(pred_ref, true_ref, out_ref, *, alpha, gamma,
                          tile_rows, j_tiles, tiles, grid_tiles, rows_in_last,
                          approx_reciprocal):
    i = pl.program_id(0)      # "parallel" stripe (v7x: one per TensorCore)
    j = pl.program_id(1)      # "arbitrary" reduction axis within the stripe
    tile_idx = i * j_tiles + j

    @pl.when(j == 0)
    def _():
        out_ref[...] = jnp.zeros_like(out_ref)

    x = pred_ref[...].astype(jnp.float32)
    y = true_ref[...].astype(jnp.float32)

    # One exp, one log1p, one reciprocal per element (single EUP slot).
    e = jnp.exp(-jnp.abs(x))
    one_p_e = 1.0 + e
    if approx_reciprocal:
        inv = pl.reciprocal(one_p_e, approx=True)
    else:
        inv = 1.0 / one_p_e
    p = jnp.where(x >= 0, inv, e * inv)                  # sigmoid(x)
    # Numerically stable binary_cross_entropy_with_logits (reduction='none').
    bce = jnp.maximum(x, 0.0) - x * y + jnp.log1p(e)
    pt = p * y + (1.0 - p) * (1.0 - y)
    omp = 1.0 - pt
    w = omp * omp if gamma == 2.0 else (omp if gamma == 1.0 else omp ** gamma)
    focal = (w if alpha == 1.0 else alpha * w) * bce

    def _accum(vals):
        # (tile_rows, 128) -> (8, 128) vreg-shaped partial: pure VALU adds
        # into the resident output block (no per-step XLU-to-scalar).
        out_ref[...] += jnp.sum(vals.reshape(tile_rows // 8, 8, LANES), axis=0)

    last = tiles - 1
    if rows_in_last != tile_rows:
        # Only the single ragged last block pays for the iota/mask/select;
        # the garbage rows of the padded window are discarded by the select.
        @pl.when(tile_idx == last)
        def _():
            row_ids = jax.lax.broadcasted_iota(jnp.int32, (tile_rows, LANES), 0)
            _accum(jnp.where(row_ids < rows_in_last, focal, 0.0))

        @pl.when(tile_idx < last)
        def _():
            _accum(focal)
        # Duplicate (clamped) slots have tile_idx > last -> contribute nothing.
    elif grid_tiles != tiles:
        # Odd tile count split across 2 stripes: skip the duplicate slot.
        @pl.when(tile_idx < tiles)
        def _():
            _accum(focal)
    else:
        _accum(focal)


def focal_loss(y_pred, y_true, alpha=ALPHA, gamma=GAMMA, *,
               max_tile_rows=2048, approx_reciprocal=False):
    assert y_pred.shape == y_true.shape
    n_elems = int(math.prod(y_pred.shape))
    if n_elems == 0:
        return jnp.float32(0.0)

    pred_flat = jnp.ravel(y_pred)   # free for contiguous inputs
    true_flat = jnp.ravel(y_true)

    main_rows = n_elems // LANES
    tail = n_elems - main_rows * LANES

    total = jnp.float32(0.0)

    if tail:
        # <=127 leftover elements: folded in with plain jnp. No full-array
        # pad copy is ever materialized for the kernel inputs.
        total = total + jnp.sum(_focal_elems(
            jax.lax.slice(pred_flat, (main_rows * LANES,), (n_elems,)),
            jax.lax.slice(true_flat, (main_rows * LANES,), (n_elems,)),
            float(alpha), float(gamma)))
        pred_flat = jax.lax.slice(pred_flat, (0,), (main_rows * LANES,))
        true_flat = jax.lax.slice(true_flat, (0,), (main_rows * LANES,))

    if main_rows:
        pred2d = pred_flat.reshape(main_rows, LANES)   # lane-dense 2D view
        true2d = true_flat.reshape(main_rows, LANES)

        # Sublane multiple by narrowest streamed dtype (f32->8, bf16->16, 8b->32).
        min_item = min(jnp.dtype(y_pred.dtype).itemsize,
                       jnp.dtype(y_true.dtype).itemsize)
        sub = max(8, 32 // max(1, min_item))

        tile_rows = min(_round_up(max_tile_rows, sub),
                        _round_up(main_rows, sub))
        tiles = pl.cdiv(main_rows, tile_rows)
        rows_in_last = main_rows - (tiles - 1) * tile_rows

        # Both v7x TensorCores get a stripe whenever there is >1 tile; an odd
        # tile count produces one clamped duplicate slot, skipped in-kernel.
        n_par = 2 if tiles >= 2 else 1
        j_tiles = pl.cdiv(tiles, n_par)
        grid_tiles = n_par * j_tiles

        if grid_tiles == tiles:
            in_idx = lambda i, j: (i * j_tiles + j, 0)
        else:
            in_idx = lambda i, j: (jnp.minimum(i * j_tiles + j, tiles - 1), 0)

        kernel = functools.partial(
            _focal_partial_kernel,
            alpha=float(alpha), gamma=float(gamma),
            tile_rows=tile_rows, j_tiles=j_tiles, tiles=tiles,
            grid_tiles=grid_tiles, rows_in_last=rows_in_last,
            approx_reciprocal=approx_reciprocal)

        bytes_accessed = (n_elems * (jnp.dtype(y_pred.dtype).itemsize
                                     + jnp.dtype(y_true.dtype).itemsize)
                          + n_par * 8 * LANES * 4)
        cost = pl.CostEstimate(flops=25 * n_elems,
                               transcendentals=3 * n_elems,
                               bytes_accessed=bytes_accessed)

        partials = pl.pallas_call(
            kernel,
            out_shape=jax.ShapeDtypeStruct((n_par * 8, LANES), jnp.float32),
            grid_spec=pltpu.PrefetchScalarGridSpec(
                num_scalar_prefetch=0,
                grid=(n_par, j_tiles),
                in_specs=[
                    pl.BlockSpec((tile_rows, LANES), in_idx),
                    pl.BlockSpec((tile_rows, LANES), in_idx),
                ],
                out_specs=pl.BlockSpec((8, LANES), lambda i, j: (i, 0)),
            ),
            compiler_params=pltpu.CompilerParams(
                dimension_semantics=("parallel", "arbitrary"),
                vmem_limit_bytes=32 * 1024 * 1024),
            cost_estimate=cost,
        )(pred2d, true2d)

        total = total + jnp.sum(partials)

    return total / jnp.float32(n_elems)


if __name__ == "__main__":
    key = jax.random.PRNGKey(0)
    k1, k2 = jax.random.split(key)
    # NCHW logits and binary targets, small shapes.
    y_pred = jax.random.normal(k1, (2, 4, 16, 16), dtype=jnp.float32)
    y_true = (jax.random.uniform(k2, (2, 4, 16, 16)) > 0.5).astype(jnp.float32)

    loss = focal_loss(y_pred, y_true)
    jax.block_until_ready(loss)

    # Pure-JAX reference check (mirrors the PyTorch forward).
    p = jax.nn.sigmoid(y_pred)
    bce = (jnp.maximum(y_pred, 0) - y_pred * y_true
           + jnp.log1p(jnp.exp(-jnp.abs(y_pred))))
    pt = p * y_true + (1 - p) * (1 - y_true)
    ref = jnp.mean(ALPHA * (1 - pt) ** GAMMA * bce)
    assert jnp.allclose(loss, ref, rtol=1e-4, atol=1e-6), (loss, ref)

    print("KERNEL_OK")
</pallas_src>

<mosaic_0001>
module attributes {stable_mosaic.version = 11 : i64} {
  func.func @_focal_partial_kernel(%arg0: i32, %arg1: i32, %arg2: memref<16x128xf32, #tpu.memory_space<vmem>>, %arg3: memref<16x128xf32, #tpu.memory_space<vmem>>, %arg4: memref<8x128xf32, #tpu.memory_space<vmem>>) attributes {dimension_semantics = [#tpu.dimension_semantics<parallel>, #tpu.dimension_semantics<arbitrary>], iteration_bounds = array<i64: 1, 1>, scalar_prefetch = 0 : i64, scratch_operands = 0 : i64, tpu.core_type = #tpu.core_type<tc>, window_params = [{transform_indices = @transform_0, window_bounds = array<i64: 16, 128>}, {transform_indices = @transform_1, window_bounds = array<i64: 16, 128>}, {transform_indices = @transform_2, window_bounds = array<i64: 8, 128>}]} {
    %c0_i32 = arith.constant 0 : i32
    %0 = arith.cmpi eq, %arg1, %c0_i32 : i32
    %1 = arith.extui %0 : i1 to i32
    %c0_i32_0 = arith.constant 0 : i32
    %2 = arith.cmpi ne, %1, %c0_i32_0 : i32
    scf.if %2 {
      %cst_16 = arith.constant 0.000000e+00 : f32
      %39 = vector.broadcast %cst_16 : f32 to vector<8x128xf32>
      %c0_17 = arith.constant 0 : index
      %c0_18 = arith.constant 0 : index
      %40 = vector.load %arg4[%c0_17, %c0_18] : memref<8x128xf32, #tpu.memory_space<vmem>>, vector<8x128xf32>
      tpu.vector_store %arg4[%c0_17, %c0_18], %39 {strides = array<i32>} : memref<8x128xf32, #tpu.memory_space<vmem>>, vector<8x128xf32>,
    } else {
    }
    %c0 = arith.constant 0 : index
    %c0_1 = arith.constant 0 : index
    %3 = vector.load %arg2[%c0, %c0_1] : memref<16x128xf32, #tpu.memory_space<vmem>>, vector<16x128xf32>
    %c0_2 = arith.constant 0 : index
    %c0_3 = arith.constant 0 : index
    %4 = vector.load %arg3[%c0_2, %c0_3] : memref<16x128xf32, #tpu.memory_space<vmem>>, vector<16x128xf32>
    %5 = math.absf %3 : vector<16x128xf32>
    %cst = arith.constant 0.000000e+00 : f32
    %6 = vector.broadcast %cst : f32 to vector<16x128xf32>
    %7 = arith.subf %6, %5 : vector<16x128xf32>
    %8 = math.exp %7 : vector<16x128xf32>
    %cst_4 = arith.constant 1.000000e+00 : f32
    %9 = vector.broadcast %cst_4 : f32 to vector<16x128xf32>
    %10 = arith.addf %9, %8 : vector<16x128xf32>
    %cst_5 = arith.constant 1.000000e+00 : f32
    %11 = vector.broadcast %cst_5 : f32 to vector<16x128xf32>
    %12 = arith.divf %11, %10 : vector<16x128xf32>
    %cst_6 = arith.constant 0.000000e+00 : f32
    %13 = vector.broadcast %cst_6 : f32 to vector<16x128xf32>
    %14 = arith.cmpf oge, %3, %13 : vector<16x128xf32>
    %15 = arith.mulf %8, %12 : vector<16x128xf32>
    %16 = arith.select %14, %12, %15 : vector<16x128xi1>, vector<16x128xf32>
    %cst_7 = arith.constant 0.000000e+00 : f32
    %17 = vector.broadcast %cst_7 : f32 to vector<16x128xf32>
    %18 = arith.maximumf %3, %17 : vector<16x128xf32>
    %19 = arith.mulf %3, %4 : vector<16x128xf32>
    %20 = arith.subf %18, %19 : vector<16x128xf32>
    %21 = math.log1p %8 : vector<16x128xf32>
    %22 = arith.addf %20, %21 : vector<16x128xf32>
    %23 = arith.mulf %16, %4 : vector<16x128xf32>
    %cst_8 = arith.constant 1.000000e+00 : f32
    %24 = vector.broadcast %cst_8 : f32 to vector<16x128xf32>
    %25 = arith.subf %24, %16 : vector<16x128xf32>
    %cst_9 = arith.constant 1.000000e+00 : f32
    %26 = vector.broadcast %cst_9 : f32 to vector<16x128xf32>
    %27 = arith.subf %26, %4 : vector<16x128xf32>
    %28 = arith.mulf %25, %27 : vector<16x128xf32>
    %29 = arith.addf %23, %28 : vector<16x128xf32>
    %cst_10 = arith.constant 1.000000e+00 : f32
    %30 = vector.broadcast %cst_10 : f32 to vector<16x128xf32>
    %31 = arith.subf %30, %29 : vector<16x128xf32>
    %32 = arith.mulf %31, %31 : vector<16x128xf32>
    %33 = arith.mulf %32, %22 : vector<16x128xf32>
    %c0_11 = arith.constant 0 : index
    %c0_12 = arith.constant 0 : index
    %34 = vector.load %arg4[%c0_11, %c0_12] : memref<8x128xf32, #tpu.memory_space<vmem>>, vector<8x128xf32>
    %35 = vector.shape_cast %33 : vector<16x128xf32> to vector<2x8x128xf32>
    %cst_13 = arith.constant dense<0.000000e+00> : vector<8x128xf32>
    %36 = vector.multi_reduction <add>, %35, %cst_13 [0] : vector<2x8x128xf32> to vector<8x128xf32>
    %37 = arith.addf %34, %36 : vector<8x128xf32>
    %c0_14 = arith.constant 0 : index
    %c0_15 = arith.constant 0 : index
    %38 = vector.load %arg4[%c0_14, %c0_15] : memref<8x128xf32, #tpu.memory_space<vmem>>, vector<8x128xf32>
    tpu.vector_store %arg4[%c0_14, %c0_15], %37 {strides = array<i32>} : memref<8x128xf32, #tpu.memory_space<vmem>>, vector<8x128xf32>,
    return
  }
  func.func @transform_0(%arg0: i32, %arg1: i32) -> (i32, i32) {
    %c1_i32 = arith.constant 1 : i32
    %0 = arith.muli %arg0, %c1_i32 : i32
    %1 = arith.addi %0, %arg1 : i32
    %c0_i32 = arith.constant 0 : i32
    %c0_i32_0 = arith.constant 0 : i32
    return %1, %c0_i32 : i32, i32
  }
  func.func @transform_1(%arg0: i32, %arg1: i32) -> (i32, i32) {
    %c1_i32 = arith.constant 1 : i32
    %0 = arith.muli %arg0, %c1_i32 : i32
    %1 = arith.addi %0, %arg1 : i32
    %c0_i32 = arith.constant 0 : i32
    %c0_i32_0 = arith.constant 0 : i32
    return %1, %c0_i32 : i32, i32
  }
  func.func @transform_2(%arg0: i32, %arg1: i32) -> (i32, i32) {
    %c0_i32 = arith.constant 0 : i32
    %c0_i32_0 = arith.constant 0 : i32
    return %arg0, %c0_i32 : i32, i32
  }
}

</mosaic_0001>

<bundles_post_ra>
// kernel: tpu_custom_call.1
= control target key start
LH: loop header
LB: loop body
LE: loop exit
PB: predicated region body
PF: predicated region fallthrough
CT: control target
= control target key end

     0   :  { %7 = vsyncpa [#allocation3], 0  ;;  %s343_s0 = inlined_call_operand.hbm [shape: f32[16,128], index: 0, kind: input, shape index: {}]   ;;  %s344_s1 = inlined_call_operand.hbm [shape: f32[16,128], index: 1, kind: input, shape index: {}]   ;;  %s345_s2 = inlined_call_operand.hbm [shape: f32[8,128], index: 2, kind: output, shape index: {}]  }
   0x1   :  { %8 = vsyncpa [#allocation6], 0 }
   0x2   :  { %9 = vsyncpa [#allocation4], 0  ;;  %s18_s11 = sshll.u32 %s343_s0, 4  ;;  %s271_s12 = smov [#allocation2]   ;;  %s19_s11 = int_to_ptr.hbm [resolvable:$true] %s18_s11 }
   0x3   :  { %s20_s13 = sshll.u32 %s271_s12, 4  ;;  %s35_s16 = sshll.u32 %s344_s1, 4  ;;  %s21_s13 = int_to_ptr.vmem [resolvable:$true] %s20_s13  ;;  %s36_s16 = int_to_ptr.hbm [resolvable:$true] %s35_s16 }
   0x4   :  { %s272_s17 = smov 128   ;;  %s273_s18 = smov 8  }
   0x5   :  { %26 = dma.hbm_to_vmem [thread:$0]  %s19_s11, 256, %s21_s13, [#allocation3], %s272_s17, %s272_s17, %s273_s18  }
   0x6   :  { %s274_s19 = smov [#allocation5]  }
   0x7   :  { %s37_s20 = sshll.u32 %s274_s19, 4  ;;  %s38_s20 = int_to_ptr.vmem [resolvable:$true] %s37_s20 }
   0x8   :  { %43 = dma.hbm_to_vmem [thread:$0]  %s36_s16, 256, %s38_s20, [#allocation6], %s272_s17, %s272_s17, %s273_s18  }
   0x9   :  { %265 = dma.done.wait [#allocation3], 256  }
   0xa   :  { %266 = vsyncadd [#allocation3], 4294967040 }
   0xb   :  { %267 = dma.done.wait [#allocation6], 256  }
   0xc   :  { %268 = vsyncadd [#allocation6], 4294967040  ;;  %v297_v0 = vld [vmem:[#allocation2] sm:$0xff]  ;;  %v299_v1 = vld [vmem:[#allocation2 + $0x8] sm:$0xff]  ;;  %s275_s0 = smov [#allocation7]   ;;  %s164_s23 = sshll.u32 %s345_s2, 4  ;;  %s165_s23 = int_to_ptr.hbm [resolvable:$true] %s164_s23 }
   0xd   :  { %v65_v2 = vand.u32 2147483647, %v297_v0  ;;  %v66_v3 = vand.u32 2147483647, %v299_v1  ;;  %vm105_vm7 = vcmp.ge.f32.partialorder %v297_v0, 0.0  ;;  %vm106_vm9 = vcmp.ge.f32.partialorder %v299_v1, 0.0 }
   0xe   :  { %v63_v33 = vld [vmem:[#allocation5] sm:$0xff]  ;;  %v64_v34 = vld [vmem:[#allocation5 + $0x8] sm:$0xff]  ;;  %v111_v36 = vmax.f32 %v297_v0, 0.0  ;;  %v112_v42 = vmax.f32 %v299_v1, 0.0  ;;  %s162_s1 = sshll.u32 %s275_s0, 4  ;;  %s163_s1 = int_to_ptr.vmem [resolvable:$true] %s162_s1 }
   0xf   :  { %v67_v4 = vsub.f32 0.0, %v65_v2  ;;  %v68_v5 = vsub.f32 0.0, %v66_v3  ;;  %v113_v43 = vmul.f32 %v63_v33, %v297_v0  ;;  %v114_v47 = vmul.f32 %v64_v34, %v299_v1 }
  0x10   :  { %v141_v51 = vsub.f32 1.0, %v63_v33  ;;  %v142_v52 = vsub.f32 1.0, %v64_v34 }
  0x11   :  { %v69_v6 = vmul.f32 1.442695, %v67_v4  ;;  %v71_v7 = vmul.f32 1.442695, %v68_v5  ;;  %v115_v63 = vsub.f32 %v111_v36, %v113_v43  ;;  %v116_v3 = vsub.f32 %v112_v42, %v114_v47 }
  0x13   :  { %181 = vpow2.f32 %v69_v6 }
  0x14   :  { %183 = vpow2.f32 %v71_v7 }
  0x19   :  { %v182_v8 = vpop.eup %181 }
  0x1a   :  { %v303_v9 = vpop.eup %183  ;;  %v73_v10 = vadd.f32 1.0, %v182_v8  ;;  %v120_v23 = vmul.f32 -0.5, %v182_v8  ;;  %v123_v32 = vand.u32 2147483647, %v182_v8 }
  0x1b   :  { %v74_v11 = vadd.f32 1.0, %v303_v9  ;;  %v129_v24 = vmul.f32 -0.5, %v303_v9  ;;  %v132_v48 = vand.u32 2147483647, %v303_v9 }
  0x1c   :  { %185 = vrcp.f32 %v73_v10  ;;  %vm80_vm0 = vweird.f32 %v73_v10  ;;  %v84_v15 = vand.u32 2147483647, %v73_v10  ;;  %v86_v16 = vand.u32 2147483648, %v73_v10 }
  0x1d   :  { %187 = vrcp.f32 %v74_v11  ;;  %vm95_vm2 = vweird.f32 %v74_v11  ;;  %v101_v19 = vand.u32 2147483648, %v74_v11  ;;  %v99_v21 = vand.u32 2147483647, %v74_v11 }
  0x1e   :  { %189 = vlog2.f32 %v73_v10  ;;  %v87_v26 = vor.u32 1.1754944e-38, %v86_v16  ;;  %vm85_vm5 = vcmp.eq.f32.partialorder %v84_v15, 8.507059e+37  ;;  %v121_v37 = vadd.f32 1.0, %v120_v23 }
  0x1f   :  { %191 = vlog2.f32 %v74_v11  ;;  %v102_v30 = vor.u32 1.1754944e-38, %v101_v19  ;;  %vm100_vm8 = vcmp.eq.f32.partialorder %v99_v21, 8.507059e+37  ;;  %v130_v38 = vadd.f32 1.0, %v129_v24 }
  0x20   :  { %vm329_vm10 = vcmp.lt.f32.partialorder %v123_v32, 0.0004427343  ;;  %v122_v55 = vmul.f32 %v182_v8, %v121_v37  ;;  %vm133_vm11 = vcmp.lt.f32.partialorder %v132_v48, 0.0004427343 }
  0x21   :  { %v131_v56 = vmul.f32 %v303_v9, %v130_v38 }
  0x22   :  { %v186_v12 = vpop.eup %185 }
  0x23   :  { %v188_v13 = vpop.eup %187  ;;  %v76_v14 = vmul.f32 %v186_v12, %v73_v10  ;;  %vm81_vm1 = vweird.f32 %v186_v12 }
  0x24   :  { %v91_v17 = vmul.f32 %v188_v13, %v74_v11  ;;  %vm96_vm3 = vweird.f32 %v188_v13  ;;  %vm308_vm4 = vmor %vm80_vm0, %vm81_vm1  ;;  %v190_v39 = vpop.eup %189 }
  0x25   :  { %v77_v18 = vsub.f32 1.0, %v76_v14  ;;  %vm313_vm6 = vmor %vm95_vm2, %vm96_vm3  ;;  %v192_v44 = vpop.eup %191  ;;  %v119_v54 = vmul.f32 0.6931472, %v190_v39 }
  0x26   :  { %v92_v20 = vsub.f32 1.0, %v91_v17  ;;  %v128_v58 = vmul.f32 0.6931472, %v192_v44 }
  0x27   :  { %v78_v22 = vmul.f32 %v186_v12, %v77_v18  ;;  %v125_v0 = vsel %vm329_vm10, %v122_v55, %v119_v54 }
  0x28   :  { %v93_v27 = vmul.f32 %v188_v13, %v92_v20  ;;  %v134_v5 = vsel %vm133_vm11, %v131_v56, %v128_v58 }
  0x29   :  { %v79_v28 = vadd.f32 %v186_v12, %v78_v22  ;;  %v136_v1 = vadd.f32 %v134_v5, %v116_v3 }
  0x2a   :  { %v94_v31 = vadd.f32 %v188_v13, %v93_v27 }
  0x2b   :  { %v83_v35 = vsel %vm308_vm4, %v186_v12, %v79_v28 }
  0x2c   :  { %v88_v40 = vsel %vm85_vm5, %v87_v26, %v83_v35  ;;  %v98_v41 = vsel %vm313_vm6, %v188_v13, %v94_v31 }
  0x2d   :  { %v103_v45 = vsel %vm100_vm8, %v102_v30, %v98_v41  ;;  %v107_v46 = vmul.f32 %v182_v8, %v88_v40  ;;  %v135_v8 = vadd.f32 %v125_v0, %v115_v63 }
  0x2e   :  { %v108_v49 = vmul.f32 %v303_v9, %v103_v45 }
  0x2f   :  { %v109_v53 = vsel %vm105_vm7, %v88_v40, %v107_v46 }
  0x30   :  { %v110_v57 = vsel %vm106_vm9, %v103_v45, %v108_v49  ;;  %v137_v59 = vmul.f32 %v109_v53, %v63_v33  ;;  %v139_v60 = vsub.f32 1.0, %v109_v53 }
  0x31   :  { %v138_v61 = vmul.f32 %v110_v57, %v64_v34  ;;  %v140_v62 = vsub.f32 1.0, %v110_v57 }
  0x32   :  { %v143_v2 = vmul.f32 %v141_v51, %v139_v60 }
  0x33   :  { %v144_v4 = vmul.f32 %v142_v52, %v140_v62 }
  0x34   :  { %v145_v6 = vadd.f32 %v143_v2, %v137_v59 }
  0x35   :  { %v146_v7 = vadd.f32 %v144_v4, %v138_v61 }
  0x36   :  { %v147_v9 = vsub.f32 1.0, %v145_v6 }
  0x37   :  { %v148_v10 = vsub.f32 1.0, %v146_v7 }
  0x38   :  { %v149_v11 = vmul.f32 %v147_v9, %v147_v9 }
  0x39   :  { %v150_v12 = vmul.f32 %v148_v10, %v148_v10 }
  0x3a   :  { %v151_v13 = vmul.f32 %v149_v11, %v135_v8 }
  0x3b   :  { %v152_v14 = vmul.f32 %v150_v12, %v136_v1 }
  0x3d   :  { %v154_v15 = vadd.f32 %v152_v14, %v151_v13 }
  0x3f   :  { %156 = vst [vmem:[#allocation7] sm:$0xff] %v154_v15 }
  0x40   :  { %167 = dma.vmem_to_hbm [thread:$0]  %s163_s1, 128, %s165_s23, [#allocation4]  }
  0x41   :  { %269 = dma.done.wait [#allocation4], 128  }
  0x42   :  { %270 = vsyncadd [#allocation4], 4294967168 }
  0x43   :  { %172 = vsyncpa [#allocation3], 1 }
  0x44   :  { %173 = vsyncpa [#allocation6], 1 }
  0x45   :  { %174 = vsyncpa [#allocation4], 1 }

</bundles_post_ra>
